<compile_context>
chip_gen: v7x
topology: tpu7x:2x2x1
jax: 0.10.0
libtpu: 0.0.40
codegen_flags: <defaults>
</compile_context>

<pallas_src>
import functools

import jax
import jax.numpy as jnp
from jax.experimental import pallas as pl
from jax.experimental.pallas import tpu as pltpu


def _round_up(a, b):
    return (a + b - 1) // b * b


# ----------------------------------------------------------------------------
# Fused Pallas kernel: corruption + encoder MLP + projector MLP (both views)
# ----------------------------------------------------------------------------
def _fused_triden_kernel(x_ref, xr_ref, m_ref, w_ref, b_ref, out_ref, *,
                         n_enc, n_total, tm, d_h, d_proj, out_pad,
                         matmul_dtype):
    """One TM-row batch tile per grid step.

    x_ref / xr_ref / m_ref : (TM, Dmax)   f32, lane-padded inputs
    w_ref                  : (L, Dmax, Dmax) packed, zero-padded weights
    b_ref                  : (L, 1, Dmax)    packed, zero-padded biases
    out_ref                : (TM, out_pad) slab = [h_reg|h_corr|p_reg|p_corr|0pad]
    """
    # SCARF corruption -- f32 on the VPU (exact formula from the module).
    x = x_ref[...]
    m = m_ref[...]
    x_corr = xr_ref[...] * m + (1.0 - m) * x

    # Stack regular + corrupted views along sublanes so every Linear runs once
    # on a (2*TM, Dmax) batch (TM is a multiple of 8 -> aligned stack/split).
    h = jnp.concatenate([x, x_corr], axis=0)

    def layer(h, i, relu):
        # bf16 operands for the MXU, f32 accumulation; bias/ReLU stay f32.
        w = w_ref[i].astype(matmul_dtype)                     # (Dmax, Dmax)
        b = b_ref[i]                                          # (1, Dmax) f32
        y = jnp.dot(h.astype(matmul_dtype), w,
                    preferred_element_type=jnp.float32) + b
        return jnp.maximum(y, 0.0) if relu else y

    for i in range(n_enc):
        h = layer(h, i, relu=(i < n_enc - 1))
    h_enc = h                                                 # (2*TM, Dmax)
    p = h_enc
    for i in range(n_enc, n_total):
        p = layer(p, i, relu=(i < n_total - 1))               # (2*TM, Dmax)

    # Lane-dense output slab: one full-width unmasked store.
    slab = jnp.concatenate(
        [h_enc[:tm, :d_h], h_enc[tm:, :d_h],
         p[:tm, :d_proj], p[tm:, :d_proj]], axis=-1)
    pad = out_pad - (2 * d_h + 2 * d_proj)
    if pad > 0:
        slab = jnp.concatenate(
            [slab, jnp.zeros((tm, pad), slab.dtype)], axis=-1)
    out_ref[...] = slab.astype(out_ref.dtype)


# ----------------------------------------------------------------------------
# Parameter packing: one weight DMA + one bias DMA
# ----------------------------------------------------------------------------
def _pack_params(enc_params, proj_params):
    all_p = list(enc_params) + list(proj_params)
    dmax = 0
    for (w, _) in all_p:
        dmax = max(dmax, w.shape[0], w.shape[1])
    L = len(all_p)
    W = jnp.zeros((L, dmax, dmax), jnp.float32)
    B = jnp.zeros((L, 1, dmax), jnp.float32)
    for i, (w, b) in enumerate(all_p):
        W = W.at[i, :w.shape[0], :w.shape[1]].set(w.astype(jnp.float32))
        B = B.at[i, :1, :w.shape[1]].set(
            jnp.reshape(b, (1, -1)).astype(jnp.float32))
    return W, B, dmax


# ----------------------------------------------------------------------------
# Wrapper: single pallas_call for the whole forward, gridded over the batch
# ----------------------------------------------------------------------------
def triden_forward(x, mask, x_random, enc_params, proj_params, *,
                   block_m=128, matmul_dtype=jnp.bfloat16):
    """Mirrors TriDeNT.forward: returns (h_reg, h_corrupted, p_reg, p_corrupted)."""
    M, d_in = x.shape
    d_h = enc_params[-1][0].shape[1]
    d_proj = proj_params[-1][0].shape[1]
    n_enc = len(enc_params)
    n_total = n_enc + len(proj_params)

    W, B, dmax = _pack_params(enc_params, proj_params)

    # Batch tile: large enough to fill the MXU when the batch allows it,
    # always a multiple of 8 (f32 sublane alignment for the view stacking).
    tm = block_m if M >= block_m else _round_up(M, 8)
    m_pad = _round_up(M, tm)
    out_width = 2 * d_h + 2 * d_proj
    out_pad = _round_up(out_width, 128)        # keep the store lane-dense

    def pad2(a):
        return jnp.pad(a.astype(jnp.float32),
                       ((0, m_pad - M), (0, dmax - d_in)))

    xp, xrp, mp = pad2(x), pad2(x_random), pad2(mask)

    grid = (m_pad // tm,)
    tile_spec = pl.BlockSpec((tm, dmax), lambda i: (i, 0))
    w_spec = pl.BlockSpec(W.shape, lambda i: (0, 0, 0))   # resident across grid
    b_spec = pl.BlockSpec(B.shape, lambda i: (0, 0, 0))
    out_spec = pl.BlockSpec((tm, out_pad), lambda i: (i, 0))

    flops = 2 * (2 * m_pad) * n_total * dmax * dmax
    bytes_accessed = 4 * (3 * xp.size + W.size + B.size + m_pad * out_pad)

    slab = pl.pallas_call(
        functools.partial(
            _fused_triden_kernel,
            n_enc=n_enc, n_total=n_total, tm=tm,
            d_h=d_h, d_proj=d_proj, out_pad=out_pad,
            matmul_dtype=matmul_dtype),
        out_shape=jax.ShapeDtypeStruct((m_pad, out_pad), x.dtype),
        grid=grid,
        in_specs=[tile_spec, tile_spec, tile_spec, w_spec, b_spec],
        out_specs=out_spec,
        compiler_params=pltpu.CompilerParams(
            dimension_semantics=("parallel",),       # v7x: shard over both TCs
            vmem_limit_bytes=32 * 1024 * 1024),      # explicit v7x-safe budget
        cost_estimate=pl.CostEstimate(
            flops=flops, transcendentals=0, bytes_accessed=bytes_accessed),
    )(xp, xrp, mp, W, B)

    h_reg = slab[:M, :d_h]
    h_corrupted = slab[:M, d_h:2 * d_h]
    p_reg = slab[:M, 2 * d_h:2 * d_h + d_proj]
    p_corrupted = slab[:M, 2 * d_h + d_proj:out_width]
    return h_reg, h_corrupted, p_reg, p_corrupted


# ----------------------------------------------------------------------------
# Pure-JAX reference (for a correctness check of the fused kernel)
# ----------------------------------------------------------------------------
def triden_forward_ref(x, mask, x_random, enc_params, proj_params):
    x_corrupted = x_random * mask + (1.0 - mask) * x

    def mlp(h, params):
        n = len(params)
        for i, (w, b) in enumerate(params):
            h = jnp.dot(h, w, preferred_element_type=jnp.float32,
                        precision=jax.lax.Precision.HIGHEST) + b
            if i < n - 1:
                h = jnp.maximum(h, 0.0)
        return h

    h_reg = mlp(x, enc_params)
    h_corrupted = mlp(x_corrupted, enc_params)
    p_reg = mlp(h_reg, proj_params)
    p_corrupted = mlp(h_corrupted, proj_params)
    return h_reg, h_corrupted, p_reg, p_corrupted


# ----------------------------------------------------------------------------
# Parameter construction (deterministic, synthetic)
# ----------------------------------------------------------------------------
def make_mlp_params(key, d_in, d_hid, d_out, num_layers):
    dims = [d_in] + [d_hid] * (num_layers - 1) + [d_out]
    params = []
    for i in range(len(dims) - 1):
        key, kw = jax.random.split(key)
        fan_in = dims[i]
        w = jax.random.normal(kw, (dims[i], dims[i + 1]), jnp.float32)
        w = w * (1.0 / jnp.sqrt(jnp.float32(fan_in)))
        b = jnp.zeros((1, dims[i + 1]), jnp.float32)
        params.append((w, b))
    return params, key


def _make_inputs(key, batch, d_reg, corruption_rate):
    key, kx, km, kr = jax.random.split(key, 4)
    x = jax.random.normal(kx, (batch, d_reg), jnp.float32)
    # marginals: Uniform(Reg_min, Reg_max) per feature (sampled host-side,
    # mirroring self.marginals.sample in the PyTorch module)
    reg_min = jnp.zeros((d_reg,), jnp.float32)
    reg_max = jnp.ones((d_reg,), jnp.float32)
    u = jax.random.uniform(kr, (batch, d_reg), jnp.float32)
    x_random = reg_min + u * (reg_max - reg_min)
    mask = jax.random.bernoulli(km, corruption_rate, (batch, d_reg)).astype(
        jnp.float32)
    return key, x, mask, x_random


if __name__ == "__main__":
    # hyper-parameters (small, consistent with the module)
    d_reg = 16           # d_in
    d_hid = 32
    d_h = 32
    d_proj = 32
    num_layers_enc = 3
    num_layers_proj = 2
    corruption_rate = 0.3

    key = jax.random.PRNGKey(0)
    enc_params, key = make_mlp_params(key, d_reg, d_hid, d_h, num_layers_enc)
    proj_params, key = make_mlp_params(key, d_h, d_hid, d_proj,
                                       num_layers_proj)

    fwd = jax.jit(triden_forward)

    # Check 1: tiny batch (single grid step).  Check 2: batch > TM so the
    # kernel exercises batch tiling, row padding and the multi-step grid.
    for batch in (8, 200):
        key, x, mask, x_random = _make_inputs(key, batch, d_reg,
                                              corruption_rate)
        outs = fwd(x, mask, x_random, enc_params, proj_params)
        jax.block_until_ready(outs)
        h_reg, h_corrupted, p_reg, p_corrupted = outs

        assert h_reg.shape == (batch, d_h)
        assert h_corrupted.shape == (batch, d_h)
        assert p_reg.shape == (batch, d_proj)
        assert p_corrupted.shape == (batch, d_proj)

        refs = triden_forward_ref(x, mask, x_random, enc_params, proj_params)
        for got, want in zip(outs, refs):
            assert jnp.allclose(got, want, atol=5e-2, rtol=5e-2), float(
                jnp.max(jnp.abs(got - want)))

    print("KERNEL_OK")
</pallas_src>

<mosaic_0001>
module attributes {stable_mosaic.version = 11 : i64} {
  func.func @_fused_triden_kernel(%arg0: i32, %arg1: memref<8x32xf32, #tpu.memory_space<vmem>>, %arg2: memref<8x32xf32, #tpu.memory_space<vmem>>, %arg3: memref<8x32xf32, #tpu.memory_space<vmem>>, %arg4: memref<5x32x32xf32, #tpu.memory_space<vmem>>, %arg5: memref<5x1x32xf32, #tpu.memory_space<vmem>>, %arg6: memref<8x128xf32, #tpu.memory_space<vmem>>) attributes {dimension_semantics = [#tpu.dimension_semantics<parallel>], iteration_bounds = array<i64: 1>, scalar_prefetch = 0 : i64, scratch_operands = 0 : i64, tpu.core_type = #tpu.core_type<tc>, window_params = [{transform_indices = @transform_0, window_bounds = array<i64: 8, 32>}, {transform_indices = @transform_1, window_bounds = array<i64: 8, 32>}, {transform_indices = @transform_2, window_bounds = array<i64: 8, 32>}, {pipeline_mode = #tpu.pipeline_mode<synchronous>, transform_indices = @transform_3, window_bounds = array<i64: 5, 32, 32>}, {pipeline_mode = #tpu.pipeline_mode<synchronous>, transform_indices = @transform_4, window_bounds = array<i64: 5, 1, 32>}, {transform_indices = @transform_5, window_bounds = array<i64: 8, 128>}]} {
    %c0 = arith.constant 0 : index
    %c0_0 = arith.constant 0 : index
    %0 = vector.load %arg1[%c0, %c0_0] : memref<8x32xf32, #tpu.memory_space<vmem>>, vector<8x32xf32>
    %c0_1 = arith.constant 0 : index
    %c0_2 = arith.constant 0 : index
    %1 = vector.load %arg3[%c0_1, %c0_2] : memref<8x32xf32, #tpu.memory_space<vmem>>, vector<8x32xf32>
    %c0_3 = arith.constant 0 : index
    %c0_4 = arith.constant 0 : index
    %2 = vector.load %arg2[%c0_3, %c0_4] : memref<8x32xf32, #tpu.memory_space<vmem>>, vector<8x32xf32>
    %3 = arith.mulf %2, %1 : vector<8x32xf32>
    %cst = arith.constant 1.000000e+00 : f32
    %4 = vector.broadcast %cst : f32 to vector<8x32xf32>
    %5 = arith.subf %4, %1 : vector<8x32xf32>
    %6 = arith.mulf %5, %0 : vector<8x32xf32>
    %7 = arith.addf %3, %6 : vector<8x32xf32>
    %8 = tpu.concatenate %0, %7 in 0 : vector<8x32xf32>, vector<8x32xf32> -> vector<16x32xf32>
    %c0_5 = arith.constant 0 : index
    %c0_6 = arith.constant 0 : index
    %c0_7 = arith.constant 0 : index
    %9 = vector.load %arg4[%c0_5, %c0_6, %c0_7] : memref<5x32x32xf32, #tpu.memory_space<vmem>>, vector<1x32x32xf32>
    %10 = vector.shape_cast %9 : vector<1x32x32xf32> to vector<32x32xf32>
    %11 = arith.truncf %10 : vector<32x32xf32> to vector<32x32xbf16>
    %c0_8 = arith.constant 0 : index
    %c0_9 = arith.constant 0 : index
    %c0_10 = arith.constant 0 : index
    %12 = vector.load %arg5[%c0_8, %c0_9, %c0_10] : memref<5x1x32xf32, #tpu.memory_space<vmem>>, vector<1x1x32xf32>
    %13 = vector.shape_cast %12 : vector<1x1x32xf32> to vector<1x32xf32>
    %14 = arith.truncf %8 : vector<16x32xf32> to vector<16x32xbf16>
    %cst_11 = arith.constant dense<0.000000e+00> : vector<16x32xf32>
    %15 = tpu.matmul %14, %11, %cst_11 {dimension_numbers = #tpu.dot_dimension_numbers<[1], [0], [0], [1], [0, 0, 1, 1], [], []>} : vector<16x32xbf16>, vector<32x32xbf16>, vector<16x32xf32> -> vector<16x32xf32>
    %16 = vector.broadcast %13 : vector<1x32xf32> to vector<16x32xf32>
    %17 = arith.addf %15, %16 : vector<16x32xf32>
    %cst_12 = arith.constant 0.000000e+00 : f32
    %18 = vector.broadcast %cst_12 : f32 to vector<16x32xf32>
    %19 = arith.maximumf %17, %18 : vector<16x32xf32>
    %c1 = arith.constant 1 : index
    %c0_13 = arith.constant 0 : index
    %c0_14 = arith.constant 0 : index
    %20 = vector.load %arg4[%c1, %c0_13, %c0_14] : memref<5x32x32xf32, #tpu.memory_space<vmem>>, vector<1x32x32xf32>
    %21 = vector.shape_cast %20 : vector<1x32x32xf32> to vector<32x32xf32>
    %22 = arith.truncf %21 : vector<32x32xf32> to vector<32x32xbf16>
    %c1_15 = arith.constant 1 : index
    %c0_16 = arith.constant 0 : index
    %c0_17 = arith.constant 0 : index
    %23 = vector.load %arg5[%c1_15, %c0_16, %c0_17] : memref<5x1x32xf32, #tpu.memory_space<vmem>>, vector<1x1x32xf32>
    %24 = vector.shape_cast %23 : vector<1x1x32xf32> to vector<1x32xf32>
    %25 = arith.truncf %19 : vector<16x32xf32> to vector<16x32xbf16>
    %cst_18 = arith.constant dense<0.000000e+00> : vector<16x32xf32>
    %26 = tpu.matmul %25, %22, %cst_18 {dimension_numbers = #tpu.dot_dimension_numbers<[1], [0], [0], [1], [0, 0, 1, 1], [], []>} : vector<16x32xbf16>, vector<32x32xbf16>, vector<16x32xf32> -> vector<16x32xf32>
    %27 = vector.broadcast %24 : vector<1x32xf32> to vector<16x32xf32>
    %28 = arith.addf %26, %27 : vector<16x32xf32>
    %cst_19 = arith.constant 0.000000e+00 : f32
    %29 = vector.broadcast %cst_19 : f32 to vector<16x32xf32>
    %30 = arith.maximumf %28, %29 : vector<16x32xf32>
    %c2 = arith.constant 2 : index
    %c0_20 = arith.constant 0 : index
    %c0_21 = arith.constant 0 : index
    %31 = vector.load %arg4[%c2, %c0_20, %c0_21] : memref<5x32x32xf32, #tpu.memory_space<vmem>>, vector<1x32x32xf32>
    %32 = vector.shape_cast %31 : vector<1x32x32xf32> to vector<32x32xf32>
    %33 = arith.truncf %32 : vector<32x32xf32> to vector<32x32xbf16>
    %c2_22 = arith.constant 2 : index
    %c0_23 = arith.constant 0 : index
    %c0_24 = arith.constant 0 : index
    %34 = vector.load %arg5[%c2_22, %c0_23, %c0_24] : memref<5x1x32xf32, #tpu.memory_space<vmem>>, vector<1x1x32xf32>
    %35 = vector.shape_cast %34 : vector<1x1x32xf32> to vector<1x32xf32>
    %36 = arith.truncf %30 : vector<16x32xf32> to vector<16x32xbf16>
    %cst_25 = arith.constant dense<0.000000e+00> : vector<16x32xf32>
    %37 = tpu.matmul %36, %33, %cst_25 {dimension_numbers = #tpu.dot_dimension_numbers<[1], [0], [0], [1], [0, 0, 1, 1], [], []>} : vector<16x32xbf16>, vector<32x32xbf16>, vector<16x32xf32> -> vector<16x32xf32>
    %38 = vector.broadcast %35 : vector<1x32xf32> to vector<16x32xf32>
    %39 = arith.addf %37, %38 : vector<16x32xf32>
    %c3 = arith.constant 3 : index
    %c0_26 = arith.constant 0 : index
    %c0_27 = arith.constant 0 : index
    %40 = vector.load %arg4[%c3, %c0_26, %c0_27] : memref<5x32x32xf32, #tpu.memory_space<vmem>>, vector<1x32x32xf32>
    %41 = vector.shape_cast %40 : vector<1x32x32xf32> to vector<32x32xf32>
    %42 = arith.truncf %41 : vector<32x32xf32> to vector<32x32xbf16>
    %c3_28 = arith.constant 3 : index
    %c0_29 = arith.constant 0 : index
    %c0_30 = arith.constant 0 : index
    %43 = vector.load %arg5[%c3_28, %c0_29, %c0_30] : memref<5x1x32xf32, #tpu.memory_space<vmem>>, vector<1x1x32xf32>
    %44 = vector.shape_cast %43 : vector<1x1x32xf32> to vector<1x32xf32>
    %45 = arith.truncf %39 : vector<16x32xf32> to vector<16x32xbf16>
    %cst_31 = arith.constant dense<0.000000e+00> : vector<16x32xf32>
    %46 = tpu.matmul %45, %42, %cst_31 {dimension_numbers = #tpu.dot_dimension_numbers<[1], [0], [0], [1], [0, 0, 1, 1], [], []>} : vector<16x32xbf16>, vector<32x32xbf16>, vector<16x32xf32> -> vector<16x32xf32>
    %47 = vector.broadcast %44 : vector<1x32xf32> to vector<16x32xf32>
    %48 = arith.addf %46, %47 : vector<16x32xf32>
    %cst_32 = arith.constant 0.000000e+00 : f32
    %49 = vector.broadcast %cst_32 : f32 to vector<16x32xf32>
    %50 = arith.maximumf %48, %49 : vector<16x32xf32>
    %c4 = arith.constant 4 : index
    %c0_33 = arith.constant 0 : index
    %c0_34 = arith.constant 0 : index
    %51 = vector.load %arg4[%c4, %c0_33, %c0_34] : memref<5x32x32xf32, #tpu.memory_space<vmem>>, vector<1x32x32xf32>
    %52 = vector.shape_cast %51 : vector<1x32x32xf32> to vector<32x32xf32>
    %53 = arith.truncf %52 : vector<32x32xf32> to vector<32x32xbf16>
    %c4_35 = arith.constant 4 : index
    %c0_36 = arith.constant 0 : index
    %c0_37 = arith.constant 0 : index
    %54 = vector.load %arg5[%c4_35, %c0_36, %c0_37] : memref<5x1x32xf32, #tpu.memory_space<vmem>>, vector<1x1x32xf32>
    %55 = vector.shape_cast %54 : vector<1x1x32xf32> to vector<1x32xf32>
    %56 = arith.truncf %50 : vector<16x32xf32> to vector<16x32xbf16>
    %cst_38 = arith.constant dense<0.000000e+00> : vector<16x32xf32>
    %57 = tpu.matmul %56, %53, %cst_38 {dimension_numbers = #tpu.dot_dimension_numbers<[1], [0], [0], [1], [0, 0, 1, 1], [], []>} : vector<16x32xbf16>, vector<32x32xbf16>, vector<16x32xf32> -> vector<16x32xf32>
    %58 = vector.broadcast %55 : vector<1x32xf32> to vector<16x32xf32>
    %59 = arith.addf %57, %58 : vector<16x32xf32>
    %60 = vector.extract_strided_slice %39 {offsets = [0, 0], sizes = [8, 32], strides = [1, 1]} : vector<16x32xf32> to vector<8x32xf32>
    %61 = vector.extract_strided_slice %39 {offsets = [8, 0], sizes = [8, 32], strides = [1, 1]} : vector<16x32xf32> to vector<8x32xf32>
    %62 = vector.extract_strided_slice %59 {offsets = [0, 0], sizes = [8, 32], strides = [1, 1]} : vector<16x32xf32> to vector<8x32xf32>
    %63 = vector.extract_strided_slice %59 {offsets = [8, 0], sizes = [8, 32], strides = [1, 1]} : vector<16x32xf32> to vector<8x32xf32>
    %64 = tpu.concatenate %60, %61, %62, %63 in 1 : vector<8x32xf32>, vector<8x32xf32>, vector<8x32xf32>, vector<8x32xf32> -> vector<8x128xf32>
    %c0_39 = arith.constant 0 : index
    %c0_40 = arith.constant 0 : index
    %65 = vector.load %arg6[%c0_39, %c0_40] : memref<8x128xf32, #tpu.memory_space<vmem>>, vector<8x128xf32>
    tpu.vector_store %arg6[%c0_39, %c0_40], %64 {strides = array<i32>} : memref<8x128xf32, #tpu.memory_space<vmem>>, vector<8x128xf32>,
    return
  }
  func.func @transform_0(%arg0: i32) -> (i32, i32) {
    %c0_i32 = arith.constant 0 : i32
    %c0_i32_0 = arith.constant 0 : i32
    return %arg0, %c0_i32 : i32, i32
  }
  func.func @transform_1(%arg0: i32) -> (i32, i32) {
    %c0_i32 = arith.constant 0 : i32
    %c0_i32_0 = arith.constant 0 : i32
    return %arg0, %c0_i32 : i32, i32
  }
  func.func @transform_2(%arg0: i32) -> (i32, i32) {
    %c0_i32 = arith.constant 0 : i32
    %c0_i32_0 = arith.constant 0 : i32
    return %arg0, %c0_i32 : i32, i32
  }
  func.func @transform_3(%arg0: i32) -> (i32, i32, i32) {
    %c0_i32 = arith.constant 0 : i32
    %c0_i32_0 = arith.constant 0 : i32
    %c0_i32_1 = arith.constant 0 : i32
    %c0_i32_2 = arith.constant 0 : i32
    return %c0_i32, %c0_i32_0, %c0_i32_1 : i32, i32, i32
  }
  func.func @transform_4(%arg0: i32) -> (i32, i32, i32) {
    %c0_i32 = arith.constant 0 : i32
    %c0_i32_0 = arith.constant 0 : i32
    %c0_i32_1 = arith.constant 0 : i32
    %c0_i32_2 = arith.constant 0 : i32
    return %c0_i32, %c0_i32_0, %c0_i32_1 : i32, i32, i32
  }
  func.func @transform_5(%arg0: i32) -> (i32, i32) {
    %c0_i32 = arith.constant 0 : i32
    %c0_i32_0 = arith.constant 0 : i32
    return %arg0, %c0_i32 : i32, i32
  }
}

</mosaic_0001>

<bundles_post_ra>
// kernel: triden_forward.1
= control target key start
LH: loop header
LB: loop body
LE: loop exit
PB: predicated region body
PF: predicated region fallthrough
CT: control target
= control target key end

     0   :  { %v445_v0 = vmov 0.0   ;;  %vm446_vm0 = vmmov 0   ;;  %vm42_vm1 = vcmask 261120   ;;  %s449_s19 = smov 96   ;;  %vm346_vm2 = vcmask 523264   ;;  %s593_s3 = inlined_call_operand.vmem [shape: f32[5,32,32], index: 3, kind: input, shape index: {}]   ;;  %s594_s0 = inlined_call_operand.vmem [shape: f32[8,32], index: 0, kind: input, shape index: {}]   ;;  %s595_s1 = inlined_call_operand.vmem [shape: f32[8,32], index: 1, kind: input, shape index: {}]   ;;  %s596_s2 = inlined_call_operand.vmem [shape: f32[8,32], index: 2, kind: input, shape index: {}]   ;;  %s597_s4 = inlined_call_operand.vmem [shape: f32[5,1,32], index: 4, kind: input, shape index: {}]   ;;  %s598_s5 = inlined_call_operand.vmem [shape: f32[8,128], index: 5, kind: output, shape index: {}]  }
   0x1   :  { %400 = vmatprep.subr.bf16.mxu0 %v445_v0  ;;  %v28_v1 = vld [vmem:[%s593_s3] sm:$0xff]  ;;  %v29_v2 = vld [vmem:[%s593_s3 + $0x8] sm:$0xff]  ;;  %v30_v3 = vld [vmem:[%s593_s3 + $0x10] sm:$0xff]  ;;  %404 = vmatprep.mubr.msk.bf16.mxu0 %vm446_vm0, %v445_v0  ;;  %vm348_vm3 = vcmask 785408  }
   0x2   :  { %v32_v4 = vpack.c.bf16 %v29_v2, %v28_v1  ;;  %v31_v5 = vld [vmem:[%s593_s3 + $0x18] sm:$0xff]  ;;  %v21_v6 = vld [vmem:[%s594_s0] sm:$0xff]  ;;  %408 = vmatprep.subr.bf16.mxu1 %v445_v0  ;;  %412 = vmatprep.mubr.msk.bf16.mxu1 %vm446_vm0, %v445_v0  ;;  %v358_v16 = vld [vmem:[%s593_s3 + $0x28] sm:$0xff] }
   0x3   :  { %v22_v7 = vld [vmem:[%s596_s2] sm:$0xff]  ;;  %v33_v10 = vpack.c.bf16 %v31_v5, %v30_v3  ;;  %v359_v18 = vld [vmem:[%s593_s3 + $0x30] sm:$0xff]  ;;  %v360_v19 = vld [vmem:[%s593_s3 + $0x38] sm:$0xff]  ;;  %s447_s2 = smov 32  }
   0x4   :  { %v23_v8 = vld [vmem:[%s595_s1] sm:$0xff]  ;;  %v25_v9 = vsub.f32 1.0, %v22_v7  ;;  %401 = vmatpush3.bf16.msra.mxu0 %v32_v4  ;;  %v95_v20 = vpack.c.bf16 %v360_v19, %v359_v18  ;;  %v365_v32 = vld [vmem:[%s593_s3 + $0x48] sm:$0xff]  ;;  %v366_v34 = vld [vmem:[%s593_s3 + $0x50] sm:$0xff] }
   0x5   :  { %v24_v11 = vmul.f32 %v23_v8, %v22_v7  ;;  %402 = vmatprep.subr.bf16.mxu0 %v445_v0  ;;  %v357_v15 = vld [vmem:[%s593_s3 + $0x20] sm:$0xff]  ;;  %v367_v35 = vld [vmem:[%s593_s3 + $0x58] sm:$0xff]  ;;  %v372_v38 = vld [vmem:[%s593_s3 + $0x68] sm:$0xff] }
   0x6   :  { %v26_v12 = vmul.f32 %v25_v9, %v21_v6  ;;  %v94_v17 = vpack.c.bf16 %v358_v16, %v357_v15  ;;  %v355_v21 = vld [vmem:[%s597_s4] ss:$0 sm:$0xff]  ;;  %v157_v36 = vpack.c.bf16 %v367_v35, %v366_v34  ;;  %v362_v40 = vld [vmem:[%s597_s4 + $0x1] ss:$0 sm:$0xff]  ;;  %v373_v50 = vld [vmem:[%s593_s3 + $0x70] sm:$0xff] }
   0x7   :  { %v364_v31 = vld [vmem:[%s593_s3 + $0x40] sm:$0xff]  ;;  %v374_v51 = vld [vmem:[%s593_s3 + $0x78] sm:$0xff]  ;;  %v379_v62 = vld [vmem:[%s593_s3 + $0x88] sm:$0xff] }
   0x8   :  { %v27_v13 = vadd.f32 %v26_v12, %v24_v11  ;;  %403 = vmatpush3.bf16.msra.mxu0 %v33_v10  ;;  %409 = vmatpush3.bf16.msra.mxu1 %v94_v17  ;;  %v156_v33 = vpack.c.bf16 %v365_v32, %v364_v31  ;;  %v371_v37 = vld [vmem:[%s593_s3 + $0x60] sm:$0xff]  ;;  %v217_v52 = vpack.c.bf16 %v374_v51, %v373_v50  ;;  %v380_v1 = vld [vmem:[%s593_s3 + $0x90] sm:$0xff]  ;;  %v381_v2 = vld [vmem:[%s593_s3 + $0x98] sm:$0xff] }
   0x9   :  { %416 = vmatprep.subr.bf16.mxu0 %v445_v0  ;;  %410 = vmatprep.subr.bf16.mxu1 %v445_v0  ;;  %v216_v39 = vpack.c.bf16 %v372_v38, %v371_v37  ;;  %v369_v53 = vld [vmem:[%s597_s4 + $0x2] ss:$0 sm:$0xff]  ;;  %v279_v3 = vpack.c.bf16 %v381_v2, %v380_v1  ;;  %v376_v4 = vld [vmem:[%s597_s4 + $0x3] ss:$0 sm:$0xff] }
   0xa   :  { %v35_v14 = vpack.c.bf16 %v27_v13, %v21_v6  ;;  %v378_v61 = vld [vmem:[%s593_s3 + $0x80] sm:$0xff]  ;;  %s448_s3 = smov 64  }
   0xb   :  { %v278_v63 = vpack.c.bf16 %v379_v62, %v378_v61  ;;  %v383_v13 = vld [vmem:[%s597_s4 + $0x4] ss:$0 sm:$0xff] }
   0xc   :  { %405 = vmatmul.mubr.msk.bf16.vlgmr.msra.gmra.mrb[0].mxu0 %vm42_vm1, %v35_v14  ;;  %411 = vmatpush3.bf16.msra.mxu1 %v95_v20 }
   0xd   :  { %420 = vmatprep.mubr.msk.bf16.mxu0 %vm446_vm0, %v445_v0  ;;  %424 = vmatprep.subr.bf16.mxu1 %v445_v0 }
   0xe   :  { %417 = vmatpush3.bf16.msra.mxu0 %v156_v33 }
   0xf   :  { %418 = vmatprep.subr.bf16.mxu0 %v445_v0 }
  0x12   :  { %419 = vmatpush3.bf16.msra.mxu0 %v157_v36 }
  0x13   :  { %432 = vmatprep.subr.bf16.mxu0 %v445_v0 }
  0xdf   :  { %v80_v22 = vpop.f32.mrb[0].mxu0 }
  0xe0   :  { %v81_v23 = vadd.f32 %v355_v21, %v80_v22  ;;  %v406_v24 = vpop.f32.mrb[1].mxu0 }
  0xe1   :  { %v83_v25 = vpop.f32.mrb[2].mxu0 }
  0xe2   :  { %v84_v26 = vadd.f32 %v355_v21, %v83_v25  ;;  %v407_v27 = vpop.f32.mrb[3].mxu0  ;;  %v87_v28 = vmax.f32 %v81_v23, 0.0 }
  0xe4   :  { %v88_v29 = vmax.f32 %v84_v26, 0.0 }
  0xe6   :  { %v98_v30 = vpack.c.bf16 %v88_v29, %v87_v28 }
  0xe8   :  { %413 = vmatmul.mubr.msk.bf16.vlgmr.msra.gmra.mrb[0].mxu1 %vm42_vm1, %v98_v30 }
  0xe9   :  { %428 = vmatprep.mubr.msk.bf16.mxu1 %vm446_vm0, %v445_v0  ;;  %425 = vmatpush3.bf16.msra.mxu1 %v216_v39 }
  0xea   :  { %426 = vmatprep.subr.bf16.mxu1 %v445_v0 }
  0xed   :  { %427 = vmatpush3.bf16.msra.mxu1 %v217_v52 }
 0x1bb   :  { %v142_v41 = vpop.f32.mrb[0].mxu1 }
 0x1bc   :  { %v143_v42 = vadd.f32 %v362_v40, %v142_v41  ;;  %v414_v43 = vpop.f32.mrb[1].mxu1 }
 0x1bd   :  { %v145_v44 = vpop.f32.mrb[2].mxu1 }
 0x1be   :  { %v146_v45 = vadd.f32 %v362_v40, %v145_v44  ;;  %v415_v46 = vpop.f32.mrb[3].mxu1  ;;  %v149_v47 = vmax.f32 %v143_v42, 0.0 }
 0x1c0   :  { %v150_v48 = vmax.f32 %v146_v45, 0.0 }
 0x1c2   :  { %v160_v49 = vpack.c.bf16 %v150_v48, %v149_v47 }
 0x1c4   :  { %421 = vmatmul.mubr.msk.bf16.vlgmr.msra.gmra.mrb[4].mxu0 %vm42_vm1, %v160_v49 }
 0x1c5   :  { %436 = vmatprep.mubr.msk.bf16.mxu0 %vm446_vm0, %v445_v0  ;;  %433 = vmatpush3.bf16.msra.mxu0 %v278_v63 }
 0x1c6   :  { %434 = vmatprep.subr.bf16.mxu0 %v445_v0 }
 0x1c9   :  { %435 = vmatpush3.bf16.msra.mxu0 %v279_v3 }
 0x297   :  { %v204_v54 = vpop.f32.mrb[4].mxu0 }
 0x298   :  { %v422_v55 = vpop.f32.mrb[5].mxu0  ;;  %v205_v57 = vadd.f32 %v369_v53, %v204_v54 }
 0x299   :  { %v207_v56 = vpop.f32.mrb[6].mxu0 }
 0x29a   :  { %v208_v58 = vadd.f32 %v369_v53, %v207_v56  ;;  %v423_v59 = vpop.f32.mrb[7].mxu0 }
 0x29c   :  { %v220_v60 = vpack.c.bf16 %v208_v58, %v205_v57  ;;  %334 = vrot.lane.b32.xlu0 %v208_v58, %s447_s2 }
 0x29e   :  { %429 = vmatmul.mubr.msk.bf16.vlgmr.msra.gmra.mrb[4].mxu1 %vm42_vm1, %v220_v60 }
 0x30e   :  { %v335_v20 = vpop.permute.xlu0 %334 }
 0x30f   :  { %v345_v21 = vsel %vm42_vm1, %v205_v57, %v335_v20 }
 0x371   :  { %v264_v5 = vpop.f32.mrb[4].mxu1 }
 0x372   :  { %v265_v6 = vadd.f32 %v376_v4, %v264_v5  ;;  %v430_v7 = vpop.f32.mrb[5].mxu1 }
 0x373   :  { %v267_v8 = vpop.f32.mrb[6].mxu1 }
 0x374   :  { %v268_v9 = vadd.f32 %v376_v4, %v267_v8  ;;  %v431_v0 = vpop.f32.mrb[7].mxu1  ;;  %v271_v10 = vmax.f32 %v265_v6, 0.0 }
 0x376   :  { %v272_v11 = vmax.f32 %v268_v9, 0.0 }
 0x378   :  { %v282_v12 = vpack.c.bf16 %v272_v11, %v271_v10 }
 0x37a   :  { %437 = vmatmul.mubr.msk.bf16.vlgmr.msra.gmra.mrb[8].mxu0 %vm42_vm1, %v282_v12 }
 0x44d   :  { %v326_v14 = vpop.f32.mrb[8].mxu0 }
 0x44e   :  { %v327_v15 = vadd.f32 %v383_v13, %v326_v14  ;;  %v438_v16 = vpop.f32.mrb[9].mxu0 }
 0x44f   :  { %v329_v17 = vpop.f32.mrb[10].mxu0 }
 0x450   :  { %v330_v18 = vadd.f32 %v383_v13, %v329_v17  ;;  %338 = vrot.lane.b32.xlu0 %v327_v15, %s448_s3  ;;  %v439_v19 = vpop.f32.mrb[11].mxu0 }
 0x452   :  { %342 = vrot.lane.b32.xlu1 %v330_v18, %s449_s19 }
 0x4c2   :  { %v339_v22 = vpop.permute.xlu0 %338 }
 0x4c3   :  { %v347_v23 = vsel %vm346_vm2, %v345_v21, %v339_v22 }
 0x4c4   :  { %v343_v24 = vpop.permute.xlu1 %342 }
 0x4c5   :  { %v349_v25 = vsel %vm348_vm3, %v347_v23, %v343_v24 }
 0x4c6   :  { %350 = vst [vmem:[%s598_s5] sm:$0xff] %v349_v25 }

</bundles_post_ra>
